<compile_context>
chip_gen: v7x
topology: tpu7x:2x2x1
jax: 0.10.0
libtpu: 0.0.40
codegen_flags: <defaults>
</compile_context>

<pallas_src>
import functools

import jax
import jax.numpy as jnp
from jax.experimental import pallas as pl
from jax.experimental.pallas import tpu as pltpu


def _channel_attention_kernel(x_ref, w1t_ref, w2t_ref, gamma_ref, o_ref,
                              sum_acc, max_acc, *, hw_total, hw_tile):
    # x_ref:    (b_tile, C, hw_tile)  native dtype, VMEM (pipelined)
    # w1t_ref:  (C, Cr)   f32, VMEM, resident (constant block index)
    # w2t_ref:  (Cr, C)   f32, VMEM, resident
    # gamma_ref:(1, 1)    f32, SMEM
    # o_ref:    (b_tile, C) f32, VMEM, resident across the HW axis
    # sum_acc / max_acc: (b_tile, C) f32 VMEM scratch accumulators
    hw_idx = pl.program_id(1)

    @pl.when(hw_idx == 0)
    def _init():
        sum_acc[...] = jnp.zeros_like(sum_acc)
        max_acc[...] = jnp.full_like(max_acc, -jnp.inf)

    # In-kernel upcast: HBM traffic stays at the native dtype width.
    x = x_ref[...].astype(jnp.float32)                      # (b_tile, C, hw_tile)

    if hw_total % hw_tile != 0:
        # Last HW tile is padded: exclude padding from sum and max.
        pos = hw_idx * hw_tile + jax.lax.broadcasted_iota(
            jnp.int32, x.shape, dimension=2)
        valid = pos < hw_total
        x_sum = jnp.where(valid, x, 0.0)
        x_max = jnp.where(valid, x, -jnp.inf)
    else:
        x_sum = x
        x_max = x

    # Cross-lane reduces go to the XLU; accumulation across HW tiles is VPU.
    sum_acc[...] += jnp.sum(x_sum, axis=2)                   # (b_tile, C)
    max_acc[...] = jnp.maximum(max_acc[...], jnp.max(x_max, axis=2))

    @pl.when(hw_idx == pl.num_programs(1) - 1)
    def _finalize():
        avg = sum_acc[...] * (1.0 / hw_total)                # mean pool
        mx = max_acc[...]                                    # max pool
        # Fused FC: stack avg/max on the sublane axis -> one matmul per layer.
        stacked = jnp.concatenate([avg, mx], axis=0)         # (2*b_tile, C)
        h = jnp.maximum(
            jnp.dot(stacked, w1t_ref[...], preferred_element_type=jnp.float32),
            0.0)                                             # (2*b_tile, Cr)
        y = jnp.dot(h, w2t_ref[...], preferred_element_type=jnp.float32)
        bt = avg.shape[0]
        gamma = gamma_ref[0, 0]
        out = y[:bt] + gamma * y[bt:]                        # LF: a + gamma * b
        o_ref[...] = jax.nn.sigmoid(out).astype(o_ref.dtype)


def _choose_tiles(B, C, HW, dsize, x_tile_budget=4 * 1024 * 1024):
    """Pick (b_tile, hw_tile) so a double-buffered x tile stays well under the
    scoped-VMEM limit on every TPU generation (incl. v7x's 64 MiB physical)."""
    b_tile = 8 if B >= 8 else B                  # 8 divides sublanes; B if small
    max_hw = x_tile_budget // max(1, b_tile * C * dsize)
    if HW <= max(128, max_hw):
        hw_tile = HW                             # single tile == full dim (legal)
    else:
        hw_tile = max(128, (max_hw // 128) * 128)  # lane-aligned multiple of 128
    return b_tile, hw_tile


def channel_attention(x, w1, w2, gamma, *, b_tile=None, hw_tile=None):
    """x: (B, C, H, W) any float dtype; w1: (C//ratio, C[,1,1]); w2: (C, C//ratio[,1,1]);
    gamma: scalar. Returns (B, C, 1, 1) f32, matching the PyTorch module."""
    B, C, H, W = x.shape
    HW = H * W
    x_flat = x.reshape(B, C, HW)                 # NO dtype cast: DMA native width
    dsize = x_flat.dtype.itemsize

    auto_b, auto_hw = _choose_tiles(B, C, HW, dsize)
    b_tile = auto_b if b_tile is None else b_tile
    hw_tile = auto_hw if hw_tile is None else hw_tile

    Cr = w1.shape[0]
    w1t = jnp.asarray(w1, jnp.float32).reshape(Cr, C).T      # (C, Cr)
    w2t = jnp.asarray(w2, jnp.float32).reshape(C, Cr).T      # (Cr, C)
    gamma_arr = jnp.asarray(gamma, jnp.float32).reshape(1, 1)

    grid = (pl.cdiv(B, b_tile), pl.cdiv(HW, hw_tile))

    kernel = functools.partial(
        _channel_attention_kernel, hw_total=HW, hw_tile=hw_tile)

    # Advisory cost: this is a big HBM reader; flops are negligible.
    cost = pl.CostEstimate(
        flops=2 * B * C * HW + 8 * B * C * Cr,
        transcendentals=B * C,
        bytes_accessed=B * C * HW * dsize + (2 * C * Cr + B * C + 1) * 4,
    )

    out = pl.pallas_call(
        kernel,
        out_shape=jax.ShapeDtypeStruct((B, C), jnp.float32),
        grid=grid,
        in_specs=[
            # x: tiled over batch and spatial; pipelined (double-buffered).
            pl.BlockSpec((b_tile, C, hw_tile), lambda b, h: (b, 0, h)),
            # Weights: constant block index -> fetched once, stay resident.
            pl.BlockSpec((C, Cr), lambda b, h: (0, 0)),
            pl.BlockSpec((Cr, C), lambda b, h: (0, 0)),
            # gamma scalar lives in SMEM, outside the tile pipeline.
            pl.BlockSpec(memory_space=pltpu.MemorySpace.SMEM),
        ],
        # Output block is constant along the HW axis -> resident accumulator,
        # written only in the finalize branch.
        out_specs=pl.BlockSpec((b_tile, C), lambda b, h: (b, 0)),
        scratch_shapes=[
            pltpu.VMEM((b_tile, C), jnp.float32),   # sum accumulator
            pltpu.VMEM((b_tile, C), jnp.float32),   # max accumulator
        ],
        compiler_params=pltpu.CompilerParams(
            dimension_semantics=("parallel", "arbitrary"),
            vmem_limit_bytes=32 * 1024 * 1024,
        ),
        cost_estimate=cost,
    )(x_flat, w1t, w2t, gamma_arr)

    return out.reshape(B, C, 1, 1)


def _reference(x, w1, w2, gamma):
    # Pure-JAX reference for sanity checking.
    xf = x.astype(jnp.float32)
    avg = jnp.mean(xf, axis=(2, 3))                          # (B, C)
    mx = jnp.max(xf, axis=(2, 3))                            # (B, C)
    w1f = jnp.asarray(w1, jnp.float32).reshape(w1.shape[0], -1)
    w2f = jnp.asarray(w2, jnp.float32).reshape(w2.shape[0], -1)

    def fc(v):
        return jnp.maximum(v @ w1f.T, 0.0) @ w2f.T

    out = fc(avg) + gamma * fc(mx)
    return jax.nn.sigmoid(out)[:, :, None, None]


if __name__ == "__main__":
    # Small deterministic example.  H=W=18 -> HW=324 is NOT a multiple of the
    # 128-wide HW tile, so the padded-tile masking path is exercised too.
    B, C, H, W = 2, 32, 18, 18
    ratio = 16
    Cr = C // ratio

    key = jax.random.PRNGKey(0)
    kx, k1, k2 = jax.random.split(key, 3)
    x = jax.random.normal(kx, (B, C, H, W), dtype=jnp.float32)
    # Conv2d(C, Cr, 1, bias=False).weight -> (Cr, C);  Conv2d(Cr, C, 1) -> (C, Cr)
    w1 = jax.random.normal(k1, (Cr, C), dtype=jnp.float32) * 0.1
    w2 = jax.random.normal(k2, (C, Cr), dtype=jnp.float32) * 0.1
    gamma = jnp.float32(0.5)  # LF.gamma init = zeros(1) + 0.5

    # f32 input, multi-tile HW reduction (grid = (1, 3)).
    out = channel_attention(x, w1, w2, gamma, hw_tile=128)
    jax.block_until_ready(out)
    ref = _reference(x, w1, w2, gamma)
    assert out.shape == (B, C, 1, 1)
    assert jnp.allclose(out, ref, atol=1e-5, rtol=1e-5), "f32 mismatch vs reference"

    # bf16 input: kernel DMAs native bf16 and upcasts in-VMEM.
    x_bf16 = x.astype(jnp.bfloat16)
    out_bf = channel_attention(x_bf16, w1, w2, gamma, hw_tile=128)
    jax.block_until_ready(out_bf)
    ref_bf = _reference(x_bf16, w1, w2, gamma)
    assert jnp.allclose(out_bf, ref_bf, atol=2e-3, rtol=2e-3), "bf16 mismatch vs reference"

    print("KERNEL_OK")
</pallas_src>

<mosaic_0001>
module attributes {stable_mosaic.version = 11 : i64} {
  func.func @_channel_attention_kernel(%arg0: i32, %arg1: i32, %arg2: memref<2x32x128xf32, #tpu.memory_space<vmem>>, %arg3: memref<32x2xf32, #tpu.memory_space<vmem>>, %arg4: memref<2x32xf32, #tpu.memory_space<vmem>>, %arg5: memref<1x1xf32, #tpu.memory_space<smem>>, %arg6: memref<2x32xf32, #tpu.memory_space<vmem>>, %arg7: memref<2x32xf32, #tpu.memory_space<vmem>>, %arg8: memref<2x32xf32, #tpu.memory_space<vmem>>) attributes {dimension_semantics = [#tpu.dimension_semantics<parallel>, #tpu.dimension_semantics<arbitrary>], iteration_bounds = array<i64: 1, 3>, scalar_prefetch = 0 : i64, scratch_operands = 2 : i64, tpu.core_type = #tpu.core_type<tc>, window_params = [{transform_indices = @transform_0, window_bounds = array<i64: 2, 32, 128>}, {pipeline_mode = #tpu.pipeline_mode<synchronous>, transform_indices = @transform_1, window_bounds = array<i64: 32, 2>}, {pipeline_mode = #tpu.pipeline_mode<synchronous>, transform_indices = @transform_2, window_bounds = array<i64: 2, 32>}, {transform_indices = @transform_3, window_bounds = array<i64: 1, 1>}, {transform_indices = @transform_4, window_bounds = array<i64: 2, 32>}]} {
    %c0_i32 = arith.constant 0 : i32
    %0 = arith.cmpi eq, %arg1, %c0_i32 : i32
    %1 = arith.extui %0 : i1 to i32
    %c0_i32_0 = arith.constant 0 : i32
    %2 = arith.cmpi ne, %1, %c0_i32_0 : i32
    scf.if %2 {
      %cst_15 = arith.constant 0.000000e+00 : f32
      %25 = vector.broadcast %cst_15 : f32 to vector<2x32xf32>
      %c0_16 = arith.constant 0 : index
      %c0_17 = arith.constant 0 : index
      %26 = vector.load %arg7[%c0_16, %c0_17] : memref<2x32xf32, #tpu.memory_space<vmem>>, vector<2x32xf32>
      tpu.vector_store %arg7[%c0_16, %c0_17], %25 {strides = array<i32>} : memref<2x32xf32, #tpu.memory_space<vmem>>, vector<2x32xf32>,
      %cst_18 = arith.constant 0xFF800000 : f32
      %27 = vector.broadcast %cst_18 : f32 to vector<2x32xf32>
      %c0_19 = arith.constant 0 : index
      %c0_20 = arith.constant 0 : index
      %28 = vector.load %arg8[%c0_19, %c0_20] : memref<2x32xf32, #tpu.memory_space<vmem>>, vector<2x32xf32>
      tpu.vector_store %arg8[%c0_19, %c0_20], %27 {strides = array<i32>} : memref<2x32xf32, #tpu.memory_space<vmem>>, vector<2x32xf32>,
    } else {
    }
    %c0 = arith.constant 0 : index
    %c0_1 = arith.constant 0 : index
    %c0_2 = arith.constant 0 : index
    %3 = vector.load %arg2[%c0, %c0_1, %c0_2] : memref<2x32x128xf32, #tpu.memory_space<vmem>>, vector<2x32x128xf32>
    %c128_i32 = arith.constant 128 : i32
    %4 = arith.muli %arg1, %c128_i32 : i32
    %5 = tpu.iota {dimensions = array<i32: 2>} : vector<2x32x128xi32>
    %6 = vector.broadcast %4 : i32 to vector<2x32x128xi32>
    %7 = arith.addi %6, %5 : vector<2x32x128xi32>
    %c324_i32 = arith.constant 324 : i32
    %8 = vector.broadcast %c324_i32 : i32 to vector<2x32x128xi32>
    %9 = arith.cmpi slt, %7, %8 : vector<2x32x128xi32>
    %cst = arith.constant 0.000000e+00 : f32
    %10 = vector.broadcast %cst : f32 to vector<2x32x128xf32>
    %11 = arith.select %9, %3, %10 : vector<2x32x128xi1>, vector<2x32x128xf32>
    %cst_3 = arith.constant 0xFF800000 : f32
    %12 = vector.broadcast %cst_3 : f32 to vector<2x32x128xf32>
    %13 = arith.select %9, %3, %12 : vector<2x32x128xi1>, vector<2x32x128xf32>
    %c0_4 = arith.constant 0 : index
    %c0_5 = arith.constant 0 : index
    %14 = vector.load %arg7[%c0_4, %c0_5] : memref<2x32xf32, #tpu.memory_space<vmem>>, vector<2x32xf32>
    %cst_6 = arith.constant dense<0.000000e+00> : vector<2x32xf32>
    %15 = vector.multi_reduction <add>, %11, %cst_6 [2] : vector<2x32x128xf32> to vector<2x32xf32>
    %16 = arith.addf %14, %15 : vector<2x32xf32>
    %c0_7 = arith.constant 0 : index
    %c0_8 = arith.constant 0 : index
    %17 = vector.load %arg7[%c0_7, %c0_8] : memref<2x32xf32, #tpu.memory_space<vmem>>, vector<2x32xf32>
    tpu.vector_store %arg7[%c0_7, %c0_8], %16 {strides = array<i32>} : memref<2x32xf32, #tpu.memory_space<vmem>>, vector<2x32xf32>,
    %c0_9 = arith.constant 0 : index
    %c0_10 = arith.constant 0 : index
    %18 = vector.load %arg8[%c0_9, %c0_10] : memref<2x32xf32, #tpu.memory_space<vmem>>, vector<2x32xf32>
    %cst_11 = arith.constant dense<0xFF800000> : vector<2x32xf32>
    %19 = vector.multi_reduction <maximumf>, %13, %cst_11 [2] : vector<2x32x128xf32> to vector<2x32xf32>
    %20 = arith.maximumf %18, %19 : vector<2x32xf32>
    %c0_12 = arith.constant 0 : index
    %c0_13 = arith.constant 0 : index
    %21 = vector.load %arg8[%c0_12, %c0_13] : memref<2x32xf32, #tpu.memory_space<vmem>>, vector<2x32xf32>
    tpu.vector_store %arg8[%c0_12, %c0_13], %20 {strides = array<i32>} : memref<2x32xf32, #tpu.memory_space<vmem>>, vector<2x32xf32>,
    %c2_i32 = arith.constant 2 : i32
    %22 = arith.cmpi eq, %arg1, %c2_i32 : i32
    %23 = arith.extui %22 : i1 to i32
    %c0_i32_14 = arith.constant 0 : i32
    %24 = arith.cmpi ne, %23, %c0_i32_14 : i32
    scf.if %24 {
      %c0_15 = arith.constant 0 : index
      %c0_16 = arith.constant 0 : index
      %25 = vector.load %arg7[%c0_15, %c0_16] : memref<2x32xf32, #tpu.memory_space<vmem>>, vector<2x32xf32>
      %cst_17 = arith.constant 0.00308641978 : f32
      %26 = vector.broadcast %cst_17 : f32 to vector<2x32xf32>
      %27 = arith.mulf %25, %26 : vector<2x32xf32>
      %c0_18 = arith.constant 0 : index
      %c0_19 = arith.constant 0 : index
      %28 = vector.load %arg8[%c0_18, %c0_19] : memref<2x32xf32, #tpu.memory_space<vmem>>, vector<2x32xf32>
      %29 = tpu.concatenate %27, %28 in 0 : vector<2x32xf32>, vector<2x32xf32> -> vector<4x32xf32>
      %c0_20 = arith.constant 0 : index
      %c0_21 = arith.constant 0 : index
      %30 = vector.load %arg3[%c0_20, %c0_21] : memref<32x2xf32, #tpu.memory_space<vmem>>, vector<32x2xf32>
      %cst_22 = arith.constant dense<0.000000e+00> : vector<4x2xf32>
      %31 = tpu.matmul %29, %30, %cst_22 {dimension_numbers = #tpu.dot_dimension_numbers<[1], [0], [0], [1], [0, 0, 1, 1], [], []>} : vector<4x32xf32>, vector<32x2xf32>, vector<4x2xf32> -> vector<4x2xf32>
      %cst_23 = arith.constant 0.000000e+00 : f32
      %32 = vector.broadcast %cst_23 : f32 to vector<4x2xf32>
      %33 = arith.maximumf %31, %32 : vector<4x2xf32>
      %c0_24 = arith.constant 0 : index
      %c0_25 = arith.constant 0 : index
      %34 = vector.load %arg4[%c0_24, %c0_25] : memref<2x32xf32, #tpu.memory_space<vmem>>, vector<2x32xf32>
      %cst_26 = arith.constant dense<0.000000e+00> : vector<4x32xf32>
      %35 = tpu.matmul %33, %34, %cst_26 {dimension_numbers = #tpu.dot_dimension_numbers<[1], [0], [0], [1], [0, 0, 1, 1], [], []>} : vector<4x2xf32>, vector<2x32xf32>, vector<4x32xf32> -> vector<4x32xf32>
      %c0_27 = arith.constant 0 : index
      %c0_28 = arith.constant 0 : index
      %36 = memref.load %arg5[%c0_27, %c0_28] : memref<1x1xf32, #tpu.memory_space<smem>>
      %37 = vector.extract_strided_slice %35 {offsets = [0, 0], sizes = [2, 32], strides = [1, 1]} : vector<4x32xf32> to vector<2x32xf32>
      %38 = vector.extract_strided_slice %35 {offsets = [2, 0], sizes = [2, 32], strides = [1, 1]} : vector<4x32xf32> to vector<2x32xf32>
      %39 = vector.broadcast %36 : f32 to vector<2x32xf32>
      %40 = arith.mulf %39, %38 : vector<2x32xf32>
      %41 = arith.addf %37, %40 : vector<2x32xf32>
      %42 = arith.negf %41 : vector<2x32xf32>
      %43 = math.exp %42 : vector<2x32xf32>
      %cst_29 = arith.constant 1.000000e+00 : f32
      %44 = vector.broadcast %cst_29 : f32 to vector<2x32xf32>
      %45 = arith.addf %44, %43 : vector<2x32xf32>
      %46 = arith.divf %44, %45 : vector<2x32xf32>
      %c0_30 = arith.constant 0 : index
      %c0_31 = arith.constant 0 : index
      %47 = vector.load %arg6[%c0_30, %c0_31] : memref<2x32xf32, #tpu.memory_space<vmem>>, vector<2x32xf32>
      tpu.vector_store %arg6[%c0_30, %c0_31], %46 {strides = array<i32>} : memref<2x32xf32, #tpu.memory_space<vmem>>, vector<2x32xf32>,
    } else {
    }
    return
  }
  func.func @transform_0(%arg0: i32, %arg1: i32) -> (i32, i32, i32) {
    %c0_i32 = arith.constant 0 : i32
    %c0_i32_0 = arith.constant 0 : i32
    return %arg0, %c0_i32, %arg1 : i32, i32, i32
  }
  func.func @transform_1(%arg0: i32, %arg1: i32) -> (i32, i32) {
    %c0_i32 = arith.constant 0 : i32
    %c0_i32_0 = arith.constant 0 : i32
    %c0_i32_1 = arith.constant 0 : i32
    return %c0_i32, %c0_i32_0 : i32, i32
  }
  func.func @transform_2(%arg0: i32, %arg1: i32) -> (i32, i32) {
    %c0_i32 = arith.constant 0 : i32
    %c0_i32_0 = arith.constant 0 : i32
    %c0_i32_1 = arith.constant 0 : i32
    return %c0_i32, %c0_i32_0 : i32, i32
  }
  func.func @transform_3(%arg0: i32, %arg1: i32) -> (i32, i32) {
    %c0_i32 = arith.constant 0 : i32
    %c0_i32_0 = arith.constant 0 : i32
    %c0_i32_1 = arith.constant 0 : i32
    return %c0_i32, %c0_i32_0 : i32, i32
  }
  func.func @transform_4(%arg0: i32, %arg1: i32) -> (i32, i32) {
    %c0_i32 = arith.constant 0 : i32
    %c0_i32_0 = arith.constant 0 : i32
    return %arg0, %c0_i32 : i32, i32
  }
}

</mosaic_0001>

<bundles_post_ra>
// kernel: tpu_custom_call.1
= control target key start
LH: loop header
LB: loop body
LE: loop exit
PB: predicated region body
PF: predicated region fallthrough
CT: control target
= control target key end

     0   :  { %s1146_s0 = inlined_call_operand.hbm [shape: f32[2,32,324], index: 0, kind: input, shape index: {}]   ;;  %s1147_s1 = inlined_call_operand.vmem [shape: f32[32,2], index: 1, kind: input, shape index: {}]   ;;  %s1148_s2 = inlined_call_operand.vmem [shape: f32[2,32], index: 2, kind: input, shape index: {}]   ;;  %s1149_s3 = inlined_call_operand.<no memory space> [shape: f32[1,1], index: 3, kind: input, shape index: {}]   ;;  %s1150_s4 = inlined_call_operand.hbm [shape: f32[2,32], index: 4, kind: output, shape index: {}]  }
   0x1   :  { %9 = sst [smem:[#allocation4]] %s1149_s3 }
   0x2   :  { %10 = vsyncpa [#allocation6], 0 }
   0x3   :  { %12 = vsyncpa [#allocation6 + $0x1], 0 }
   0x4   :  { %13 = vsyncpa [#allocation7], 0  ;;  %s932_s17 = smov 0   ;;  %s934_s18 = smov 0  }
   0x5   :  { %s936_s19 = smov 0   ;;  %s938_s20 = smov 0  }
   0x6   :  { %s940_s21 = smov 0   ;;  %s942_s22 = smov 0  }
   0x7 LB: > { %s661_s3 = sadd.s32 4294967295, %s892_s22   ;;  %s28_s23 = sadd.s32 1, %s888_s21  ;;  %s892_s22 = sphi %s942_s22, %s19_s22   ;;  %s888_s21 = sphi %s940_s21, %s1160_s21   ;;  %s884_s20 = sphi %s938_s20, %s1159_s20   ;;  %s880_s19 = sphi %s936_s19, %s1158_s19   ;;  %s876_s18 = sphi %s934_s18, %s1157_s18   ;;  %s872_s17 = sphi %s932_s17, %s1156_s17  }
   0x8   : > { %p29_p0 = scmp.ge.s32.totalorder %s28_s23, 3  ;;  %s40_s24 = sadd.s32 1, %s880_s19 }
   0x9   : > { %p47_p1 = scmp.ne.s32.totalorder %s880_s19, %s876_s18  ;;  %p48_p2 = scmp.eq.s32.totalorder %s892_s22, 0 }
   0xa   : > { %s1162_s23 = smov (%p29_p0, %s28_s23), 0  ;;  %p53_p4 = scmp.ne.s32.totalorder %s876_s18, %s872_s17 }
   0xb   : > { %p968_p3 = por %p48_p2, %p47_p1  ;;  %s36_s26 = ssub.s32 %s888_s21, %s1162_s23 }
   0xc   : > { %p54_p5 = scmp.eq.s32.totalorder %s661_s3, 0  ;;  %p38_p6 = scmp.eq.s32.totalorder %s36_s26, 0 }
   0xd   : > { %p718_p8 = scmp.lt.s32.totalorder %s892_s22, 3  ;;  %s175_s29 = sand.u32 1, %s880_s19  }
   0xe   : > { %p977_p7 = por %p54_p5, %p53_p4  ;;  %s665_s30 = sshll.u32 %s888_s21, 7 }
   0xf   : > { %s983_s28 = scalar_select %p38_p6, %s880_s19, %s40_s24  }
  0x10   : > { %s664_s5 = sshll.u32 %s175_s29, 6  ;;  %s990_s8 = scalar_lea.hbm %s1146_s0, %s665_s30 }
  0x11   : > { %s179_s9 = scalar_lea.vmem [#allocation5], %s664_s5  ;;  %p994_p9 = pnand %p718_p8, %p968_p3 }
  0x12   : > { %s188_s10 = sshll.u32 %s179_s9, 4  ;;  %s1001_s12 = scalar_lea.sflag [#allocation6], %s175_s29  ;;  %s998_s10 = int_to_ptr.vmem [resolvable:$true] %s188_s10 }
  0x13   : > { %s782_s13 = scalar_lea.hbm %s990_s8, 1024  ;;  %p784_p12 = pneg %p994_p9 }
  0x14   : > { %p783_p11 = scmp.ne.s32.totalorder %s990_s8, %s782_s13  ;;  %s787_s16 = scalar_lea.hbm %s1146_s0, 3072 }
  0x15   : > { %p788_p1 = scmp.lt.u32.totalorder %s990_s8, %s1146_s0  ;;  %p789_p2 = scmp.lt.u32.totalorder %s787_s16, %s782_s13 }
  0x16   : > { %p785_p13 = pnand %p784_p12, %p783_p11  ;;  %p791_p4 = scmp.lt.u32.totalorder %s782_s13, %s990_s8 }
  0x17   : > { %p790_p3 = por %p789_p2, %p788_p1 }
  0x18   : > { %p786_p0 = pneg %p785_p13 }
  0x19   : > { %p792_p5 = por %p791_p4, %p790_p3 }
  0x1b   : > { %p793_p6 = pnand %p792_p5, %p786_p0 }
  0x1d   : > { %796 = shalt.err (!%p793_p6)
}
  0x1e   : > { %s797_s25 = scalar_lea.vmem %s998_s10, 1024  ;;  %s894_s26 = smov [#allocation5]  }
  0x1f   : > { %p798_p8 = scmp.ne.s32.totalorder %s998_s10, %s797_s25  ;;  %s802_s29 = sshll.u32 %s894_s26, 4  ;;  %s803_s29 = int_to_ptr.vmem [resolvable:$false] %s802_s29 }
  0x20   : > { %s804_s30 = scalar_lea.vmem %s803_s29, 2048  ;;  %p805_p10 = scmp.lt.s32.totalorder %s998_s10, %s803_s29 }
  0x21   : > { %p800_p11 = pnand %p798_p8, %p784_p12  ;;  %p806_p1 = scmp.lt.s32.totalorder %s804_s30, %s797_s25 }
  0x23   : > { %p801_p13 = pneg %p800_p11  ;;  %p807_p2 = por %p806_p1, %p805_p10 }
  0x25   : > { %p808_p3 = pnand %p807_p2, %p801_p13 }
  0x27   : > { %811 = shalt.err (!%p808_p3)
}
  0x28   : > { %s895_s5 = smov 384   ;;  %s896_s6 = smov 128  }
  0x29   : > { %s897_s7 = smov 8   ;;  %p196_p12 = scmp.lt.s32.totalorder %s892_s22, 4 }
  0x2a   : > { %717 = dma.hbm_to_vmem [thread:$0]  (!%p994_p9), %s990_s8, 1024, %s998_s10, %s1001_s12, %s895_s5, %s896_s6, %s897_s7  }
  0x2b   : > { %p1154_p0 = scmp.ge.s32.totalorder %s892_s22, 1 }
  0x2d   : > { %p197_p4 = pnand %p1154_p0, %p196_p12 }
  0x2e   : > { %s202_s9 = sand.u32 (!%p197_p4), 1, %s876_s18  }
  0x2f   : > { %200 = sbr.rel (%p197_p4) target bundleno = 743 (0x2e7), region = 36  ;;  %s667_s13 = sshll.u32 (!%p197_p4), %s202_s9, 6 }
  0x30   : > { %s203_s14 = scalar_lea.sflag (!%p197_p4), [#allocation6], %s202_s9  ;;  %s1033_s15 = scalar_lea.vmem (!%p197_p4), [#allocation5], %s667_s13 }
  0x36   : > { %863 = dma.done.wait (%p977_p7), %s203_s14, 1024  }
  0x37   : > { %865 = vsyncadd (%p977_p7), %s203_s14, 4294966272  ;;  %p668_p10 = scmp.ne.s32.totalorder %s884_s20, 0 }
  0x38   : > { %vm231_vm0 = vcmask (!%p668_p10), 254976   ;;  %v898_v0 = vmov (!%p668_p10), 0.0   ;;  %v899_v1 = vmov (!%p668_p10), -inf  }
  0x39   : > { %230 = sbr.rel (%p668_p10) target bundleno = 64 (0x40), region = 44  ;;  %232 = vst.msk [vmem:[#allocation2] sm:$0x3] (!%p668_p10), %vm231_vm0, %v898_v0  ;;  %233 = vst.msk [vmem:[#allocation3] sm:$0x3] (!%p668_p10), %vm231_vm0, %v899_v1 }
  0x40 PF: > { %s669_s8 = sshll.u32 %s884_s20, 7  ;;  %v243_v2 = vlaneseq  ;;  %v238_v6 = vld [vmem:[%s1033_s15 + $0x20] sm:$0xff]  ;;  %v239_v10 = vld [vmem:[%s1033_s15 + $0x28] sm:$0xff]  ;;  %v240_v20 = vld [vmem:[%s1033_s15 + $0x30] sm:$0xff]  ;;  %vm298_vm2 = vcmask 130112   ;;  %vm305_vm3 = vcmask 195712  }
  0x41   : > { %v245_v3 = vstv %s669_s8  ;;  %v234_v8 = vld [vmem:[%s1033_s15] sm:$0xff]  ;;  %v235_v11 = vld [vmem:[%s1033_s15 + $0x8] sm:$0xff]  ;;  %v236_v21 = vld [vmem:[%s1033_s15 + $0x10] sm:$0xff]  ;;  %vm312_vm4 = vcmask 261312   ;;  %vm333_vm5 = vcmask 1041409   ;;  %vm337_vm6 = vcmask 254976  }
  0x42   : > { %v244_v4 = vand.u32 127, %v243_v2  ;;  %v290_v5 = vshrl.u32 %v243_v2, 7  ;;  %v241_v28 = vld [vmem:[%s1033_s15 + $0x38] sm:$0xff]  ;;  %p670_p7 = scmp.ne.s32.totalorder %s884_s20, 2 }
  0x43   : > { %v237_v29 = vld [vmem:[%s1033_s15 + $0x18] sm:$0xff]  ;;  %vm901_vm7 = vmmov (!%p670_p7), 0   ;;  %vm416_vm8 = vcmask (!%p670_p7), 1041408   ;;  %vm422_vm9 = vcmask (!%p670_p7), 261120   ;;  %vm498_vm10 = vcmask (!%p670_p7), 15360   ;;  %s575_s29 = sld [smem:[#allocation4]] (!%p670_p7) }
  0x44   : > { %v246_v7 = vadd.s32 %v245_v3, %v244_v4  ;;  %v1043_v9 = vsub.s32 %v244_v4, %v290_v5  ;;  %v293_v24 = vadd.s32 4294967288, %v244_v4  ;;  %v300_v34 = vadd.s32 4294967280, %v244_v4 }
  0x45   : > { %v307_v36 = vadd.s32 4294967272, %v244_v4 }
  0x46   : > { %vm247_vm1 = vcmp.lt.s32.totalorder %v246_v7, 324  ;;  %v296_v25 = vsub.s32 %v293_v24, %v290_v5  ;;  %v303_v35 = vsub.s32 %v300_v34, %v290_v5  ;;  %v418_v24 = vld [vmem:[%s1147_s1] sm:$0xff] (!%p670_p7) }
  0x47   : > { %v252_v12 = vsel %vm247_vm1, %v238_v6, 0.0  ;;  %v248_v13 = vsel %vm247_vm1, %v234_v8, 0.0  ;;  %v253_v14 = vsel %vm247_vm1, %v239_v10, 0.0  ;;  %v249_v15 = vsel %vm247_vm1, %v235_v11, 0.0 }
  0x48   : > { %273 = vadd.xlane.f32.xlu1 %v252_v12  ;;  %265 = vadd.xlane.f32.xlu0 %v248_v13  ;;  %v257_v16 = vsel %vm247_vm1, %v235_v11, -inf  ;;  %v256_v17 = vsel %vm247_vm1, %v234_v8, -inf  ;;  %v261_v18 = vsel %vm247_vm1, %v239_v10, -inf  ;;  %v260_v19 = vsel %vm247_vm1, %v238_v6, -inf  ;;  %v264_v10 = vld [vmem:[#allocation2] sm:$0x3] }
  0x49   : > { %v254_v22 = vsel %vm247_vm1, %v240_v20, 0.0  ;;  %v250_v23 = vsel %vm247_vm1, %v236_v21, 0.0  ;;  %v262_v26 = vsel %vm247_vm1, %v240_v20, -inf  ;;  %v258_v27 = vsel %vm247_vm1, %v236_v21, -inf }
  0x4a   : > { %v255_v30 = vsel %vm247_vm1, %v241_v28, 0.0  ;;  %v251_v31 = vsel %vm247_vm1, %v237_v29, 0.0  ;;  %v263_v32 = vsel %vm247_vm1, %v241_v28, -inf  ;;  %v259_v33 = vsel %vm247_vm1, %v237_v29, -inf  ;;  %v421_v29 = vld [vmem:[%s1147_s1 + $0x18] sm:$0xff] (!%p670_p7) }
  0x4b   : > { %v310_v37 = vsub.s32 %v307_v36, %v290_v5 }
  0x4c   : > { %275 = vadd.xlane.f32.xlu1 %v253_v14  ;;  %267 = vadd.xlane.f32.xlu0 %v249_v15 }
  0x50   : > { %342 = vmax.xlane.f32.xlu1 %v257_v16  ;;  %340 = vmax.xlane.f32.xlu0 %v256_v17 }
  0x54   : > { %350 = vmax.xlane.f32.xlu1 %v261_v18  ;;  %348 = vmax.xlane.f32.xlu0 %v260_v19  ;;  %v339_v19 = vld [vmem:[#allocation3] sm:$0x3] }
  0x58   : > { %277 = vadd.xlane.f32.xlu1 %v254_v22  ;;  %269 = vadd.xlane.f32.xlu0 %v250_v23 }
  0x5c   : > { %352 = vmax.xlane.f32.xlu1 %v262_v26  ;;  %344 = vmax.xlane.f32.xlu0 %v258_v27  ;;  %v420_v26 = vld [vmem:[%s1147_s1 + $0x10] sm:$0xff] (!%p670_p7)  ;;  %v900_v27 = vmov (!%p670_p7), 0.0|0.0  }
  0x5d   : > { %702 = vmatprep.subr.bf16.mxu0 (!%p670_p7), %v900_v27 }
  0x60   : > { %279 = vadd.xlane.f32.xlu1 %v255_v30  ;;  %271 = vadd.xlane.f32.xlu0 %v251_v31  ;;  %v902_v30 = vmov (!%p670_p7), 0.0  }
  0x61   : > { %694 = vmatprep.mubr.msk.f32.mxu0 (!%p670_p7), %vm901_vm7, %v902_v30  ;;  %697 = vmatprep.subr.mxu1 (!%p670_p7), %v902_v30 }
  0x62   : > { %699 = vmatprep.mubr.msk.f32.mxu1 (!%p670_p7), %vm901_vm7, %v902_v30 }
  0x64   : > { %354 = vmax.xlane.f32.xlu1 %v263_v32  ;;  %346 = vmax.xlane.f32.xlu0 %v259_v33  ;;  %v706_v33 = vpack.c.bf16 (!%p670_p7), %v421_v29, %v420_v26 }
  0xd5   : > { %v274_v38 = vpop.xlane.xlu1 %273  ;;  %v266_v39 = vpop.xlane.xlu0 %265 }
  0xd6   : > { %v317_v42 = vrot.slane %v274_v38, %v1043_v9  ;;  %v292_v43 = vrot.slane %v266_v39, %v1043_v9 }
  0xd9   : > { %v276_v40 = vpop.xlane.xlu1 %275  ;;  %v268_v41 = vpop.xlane.xlu0 %267 }
  0xda   : > { %v321_v44 = vrot.slane %v276_v40, %v296_v25  ;;  %v297_v45 = vrot.slane %v268_v41, %v296_v25  ;;  %v576_v41 = vstv (!%p670_p7), %s575_s29 }
  0xdc   : > { %v322_v46 = vsel %vm298_vm2, %v321_v44, %v317_v42  ;;  %v299_v47 = vsel %vm298_vm2, %v297_v45, %v292_v43 }
  0xdd   : > { %v343_v48 = vpop.xlane.xlu1 %342  ;;  %v341_v49 = vpop.xlane.xlu0 %340 }
  0xde   : > { %v371_v50 = vrot.slane %v343_v48, %v296_v25  ;;  %v367_v51 = vrot.slane %v341_v49, %v1043_v9 }
  0xe0   : > { %v372_v52 = vsel %vm298_vm2, %v371_v50, %v367_v51 }
  0xe1   : > { %v351_v53 = vpop.xlane.xlu1 %350  ;;  %v349_v54 = vpop.xlane.xlu0 %348 }
  0xe2   : > { %v390_v55 = vrot.slane %v351_v53, %v296_v25  ;;  %v386_v56 = vrot.slane %v349_v54, %v1043_v9  ;;  %v419_v25 = vld [vmem:[%s1147_s1 + $0x8] sm:$0xff] (!%p670_p7) }
  0xe3   : > { %v703_v28 = vpack.c.bf16 (!%p670_p7), %v419_v25, %v418_v24 }
  0xe4   : > { %v391_v57 = vsel %vm298_vm2, %v390_v55, %v386_v56 }
  0xe5   : > { %v278_v58 = vpop.xlane.xlu1 %277  ;;  %v270_v59 = vpop.xlane.xlu0 %269  ;;  %704 = vmatpush3.bf16.msra.mxu0 (!%p670_p7), %v703_v28 }
  0xe6   : > { %v326_v60 = vrot.slane %v278_v58, %v303_v35  ;;  %v304_v61 = vrot.slane %v270_v59, %v303_v35  ;;  %705 = vmatprep.subr.bf16.mxu0 (!%p670_p7), %v900_v27 }
  0xe8   : > { %v327_v62 = vsel %vm305_vm3, %v326_v60, %v322_v46  ;;  %v306_v63 = vsel %vm305_vm3, %v304_v61, %v299_v47 }
  0xe9   : > { %v353_v0 = vpop.xlane.xlu1 %352  ;;  %v345_v1 = vpop.xlane.xlu0 %344  ;;  %707 = vmatpush3.bf16.msra.mxu0 (!%p670_p7), %v706_v33 }
  0xea   : > { %v395_v2 = vrot.slane %v353_v0, %v303_v35  ;;  %v376_v3 = vrot.slane %v345_v1, %v303_v35 }
  0xec   : > { %v396_v4 = vsel %vm305_vm3, %v395_v2, %v391_v57  ;;  %v377_v5 = vsel %vm305_vm3, %v376_v3, %v372_v52 }
  0xed   : > { %v280_v6 = vpop.xlane.xlu1 %279  ;;  %v272_v7 = vpop.xlane.xlu0 %271 }
  0xee   : > { %v331_v8 = vrot.slane %v280_v6, %v310_v37  ;;  %v311_v9 = vrot.slane %v272_v7, %v310_v37 }
  0xf0   : > { %v332_v11 = vsel %vm312_vm4, %v331_v8, %v327_v62  ;;  %v313_v12 = vsel %vm312_vm4, %v311_v9, %v306_v63 }
  0xf1   : > { %v334_v13 = vsel %vm333_vm5, %v332_v11, %v313_v12  ;;  %v355_v14 = vpop.xlane.xlu1 %354  ;;  %v347_v15 = vpop.xlane.xlu0 %346 }
  0xf2   : > { %v336_v16 = vadd.f32 %v334_v13, %v264_v10  ;;  %v400_v17 = vrot.slane %v355_v14, %v310_v37  ;;  %v381_v18 = vrot.slane %v347_v15, %v310_v37  ;;  %409 = sbr.rel (%p670_p7) target bundleno = 718 (0x2ce), region = 48  ;;  %v497_v37 = vld [vmem:[%s1148_s2] sm:$0x3] (!%p670_p7) }
  0xf3   : > { %698 = vmatpush3.msk.msra.mxu1 (!%p670_p7), %vm416_vm8, %v497_v37 }
  0xf4   : > { %338 = vst.msk [vmem:[#allocation2] sm:$0x3] %vm337_vm6, %v336_v16  ;;  %v401_v20 = vsel %vm312_vm4, %v400_v17, %v396_v4  ;;  %v382_v21 = vsel %vm312_vm4, %v381_v18, %v377_v5 }
  0xf5   : > { %v402_v22 = vsel %vm333_vm5, %v401_v20, %v382_v21 }
  0xf6   : > { %v404_v23 = vmax.f32 %v339_v19, %v402_v22 }
  0xf8   : > { %405 = vst.msk [vmem:[#allocation3] sm:$0x3] %vm337_vm6, %v404_v23 }
  0xfb   : > { %v410_v31 = vld [vmem:[#allocation2] sm:$0x3] }
  0xfc   : > { %v411_v34 = vmul.f32 0.0030864198, %v410_v31 }
  0xff   : > { %v412_v32 = vld [vmem:[#allocation3] sm:$0x3] }
 0x100   : > { %v414_v35 = vrot.slane %v412_v32, 6 }
 0x102   : > { %v417_v36 = vsel %vm416_vm8, %v411_v34, %v414_v35 }
 0x103   : > { %695 = vmatmul.mubr.msk.f32.vlgmr.msra.gmra.mrb[0].mxu0 %vm422_vm9, %v417_v36 }
 0x1d6   : > { %v492_v38 = vpop.f32.mrb[0].mxu0 }
 0x1d7   : > { %v496_v39 = vmax.f32 %v492_v38, 0.0  ;;  %v696_v40 = vpop.f32.mrb[1].mxu0 }
 0x1d9   : > { %700 = vmatmul.mubr.msk.f32.vlgmr.msra.gmra.mrb[0].mxu1 %vm498_vm10, %v496_v39 }
 0x2ac   : > { %v571_v42 = vpop.f32.mrb[0].mxu1 }
 0x2ad   : > { %v577_v43 = vmul.f32 %v576_v41, %v571_v42  ;;  %v701_v44 = vpop.f32.mrb[1].mxu1 }
 0x2af   : > { %v579_v45 = vrot.slane %v577_v43, 2 }
 0x2b1   : > { %v581_v46 = vadd.f32 %v579_v45, %v571_v42 }
 0x2b3   : > { %v674_v47 = vmul.f32 -1.442695, %v581_v46 }
 0x2b5   : > { %778 = vpow2.f32 %v674_v47 }
 0x2bf   : > { %v779_v48 = vpop.eup %778 }
 0x2c0   : > { %v585_v49 = vadd.f32 1.0, %v779_v48 }
 0x2c2   : > { %780 = vrcp.f32 %v585_v49 }
 0x2cc   : > { %v781_v50 = vpop.eup %780 }
 0x2cd   : > { %588 = vst.msk [vmem:[#allocation8] sm:$0x3] %vm337_vm6, %v781_v50 }
 0x2ce PF: > { %p1102_p9 = scmp.eq.s32.totalorder %s661_s3, 2  ;;  %s903_s5 = smov [#allocation8]  }
 0x2cf   : > { %s598_s6 = sshll.u32 %s903_s5, 4  ;;  %s599_s6 = int_to_ptr.vmem [resolvable:$true] %s598_s6 }
 0x2d0   : > { %s812_s7 = scalar_lea.vmem %s599_s6, 32  ;;  %p819_p11 = scmp.lt.s32.totalorder %s599_s6, %s599_s6 }
 0x2d1   : > { %p813_p5 = scmp.ne.s32.totalorder %s599_s6, %s812_s7  ;;  %p820_p13 = scmp.lt.s32.totalorder %s812_s7, %s812_s7 }
 0x2d3   : > { %p814_p6 = pnand %p813_p5, %p1102_p9  ;;  %p821_p1 = por %p820_p13, %p819_p11 }
 0x2d5   : > { %p815_p8 = pneg %p814_p6 }
 0x2d7   : > { %p822_p2 = pnand %p821_p1, %p815_p8 }
 0x2d9   : > { %825 = shalt.err (!%p822_p2)
}
 0x2da   : > { %s826_s3 = scalar_lea.hbm %s1150_s4, 32 }
 0x2db   : > { %p827_p3 = scmp.ne.s32.totalorder %s1150_s4, %s826_s3  ;;  %p832_p4 = scmp.lt.u32.totalorder %s826_s3, %s1150_s4 }
 0x2dd   : > { %p828_p12 = pnand %p827_p3, %p1102_p9 }
 0x2df   : > { %p829_p0 = pneg %p828_p12 }
 0x2e1   : > { %p834_p10 = pnand %p832_p4, %p829_p0 }
 0x2e3   : > { %837 = shalt.err (!%p834_p10)
}
 0x2e4   : > { %711 = dma.vmem_to_hbm [thread:$0]  (%p1102_p9), %s599_s6, 32, %s1150_s4, [#allocation7]  }
 0x2e5   : > { %867 = dma.done.wait (%p1102_p9), [#allocation7], 32  }
 0x2e6   : > { %869 = vsyncadd (%p1102_p9), [#allocation7], 4294967264 }
 0x2e7 PF: > { %s19_s22 = sadd.s32 1, %s892_s22   ;;  %s1156_s17 = smov %s876_s18 }
 0x2e8   : > { %p16_p7 = scmp.ge.s32.totalorder %s19_s22, 5   ;;  %s1157_s18 = smov %s880_s19 }
 0x2e9   : > { %s1158_s19 = smov %s983_s28  ;;  %s1159_s20 = smov %s888_s21 }
 0x2ea   : > { %s1160_s21 = smov %s1162_s23  ;;  %18 = sbr.rel (!%p16_p7) target bundleno = 7 (0x7), region = 82 }
 0x2f1   :  { %611 = vsyncpa [#allocation6], 1 }
 0x2f2   :  { %613 = vsyncpa [#allocation6 + $0x1], 1 }
 0x2f3   :  { %614 = vsyncpa [#allocation7], 1 }
 0x2f4   :  { %616 = vsyncpa [#allocation7 + $0x1], 1 }

</bundles_post_ra>
